<compile_context>
chip_gen: v6e
topology: v6e:2x2x1
jax: 0.10.0
libtpu: 0.0.40
codegen_flags: <defaults>
</compile_context>

<pallas_src>
import functools

import jax
import jax.numpy as jnp
import numpy as np
from jax import lax
from jax.experimental import pallas as pl
from jax.experimental.pallas import tpu as pltpu

IGNORE_INDEX = -100
NEG_BIG = -1.0e9      # same constant as the PyTorch masked_fill
NEG_INIT = -1.0e30    # finite "minus infinity" for running-max init / OOB padding


def _vmem_full():
    return pl.BlockSpec(memory_space=pltpu.MemorySpace.VMEM)


def _align_up(x, m):
    return ((x + m - 1) // m) * m


def _tpu_vmem_capacity_bytes():
    """Generation-aware physical VMEM size (v5e/v6e 128 MiB, v7x 64 MiB per TC)."""
    try:
        cap = getattr(pltpu.get_tpu_info(), "vmem_capacity_bytes", None)
        if cap:
            return int(cap)
    except Exception:
        pass
    return 64 * 1024 * 1024   # conservative fallback (v7x per-TensorCore VMEM)


# ----------------------------------------------------------------------------
# Tiled cross-entropy kernel (language-model loss hot path).
# grid = (row_tiles, vocab_tiles); online-softmax accumulators in VMEM scratch.
# Finalize emits per-row-tile (loss_sum, valid_sum) into a lane-dense (8,128) tile.
# ----------------------------------------------------------------------------
def _ce_tiled_kernel(logits_ref, labels_ref, out_ref, m_scr, l_scr, c_scr, *,
                     ignore_index, n_rows, n_cols, rows_ragged, cols_ragged):
    r = pl.program_id(0)
    v = pl.program_id(1)
    nv = pl.num_programs(1)
    tm, tv = logits_ref.shape

    @pl.when(v == 0)
    def _init():
        m_scr[...] = jnp.full_like(m_scr, NEG_INIT)
        l_scr[...] = jnp.zeros_like(l_scr)
        c_scr[...] = jnp.zeros_like(c_scr)

    logits = logits_ref[...].astype(jnp.float32)          # native-dtype DMA, f32 math
    labels = labels_ref[...]                              # [tm, 1] int32
    col_local = lax.broadcasted_iota(jnp.int32, (1, tv), 1)

    # Ragged-edge masking only when the wrapper statically knows tiles don't divide
    # exactly; interior-tiling kernels carry zero per-element mask work.
    if cols_ragged:
        logits = jnp.where(col_local < (n_cols - v * tv), logits, NEG_INIT)
    if rows_ragged:
        row_local = lax.broadcasted_iota(jnp.int32, (tm, 1), 0)
        logits = jnp.where(row_local < (n_rows - r * tm), logits, NEG_INIT)

    m_prev = m_scr[...]
    m_new = jnp.maximum(m_prev, jnp.max(logits, axis=-1, keepdims=True))
    l_scr[...] = (l_scr[...] * jnp.exp(m_prev - m_new)
                  + jnp.sum(jnp.exp(logits - m_new), axis=-1, keepdims=True))
    # Correct-logit pick: tile-local column compare; padded rows/cols contribute
    # finite garbage that is zeroed by `valid` in the finalize.
    hit = col_local == (labels - v * tv)
    c_scr[...] = c_scr[...] + jnp.sum(jnp.where(hit, logits, 0.0),
                                      axis=-1, keepdims=True)
    m_scr[...] = m_new

    @pl.when(v == nv - 1)
    def _finalize():
        valid = (labels != ignore_index).astype(jnp.float32)
        if rows_ragged:
            row_local = lax.broadcasted_iota(jnp.int32, (tm, 1), 0)
            valid = jnp.where(row_local < (n_rows - r * tm), valid, 0.0)
        lse = m_scr[...] + jnp.log(l_scr[...])
        loss_sum = jnp.sum((lse - c_scr[...]) * valid)
        valid_sum = jnp.sum(valid)
        ri8 = lax.broadcasted_iota(jnp.int32, (8, 128), 0)
        ci8 = lax.broadcasted_iota(jnp.int32, (8, 128), 1)
        tile = jnp.where((ri8 == 0) & (ci8 == 0), loss_sum,
                         jnp.where((ri8 == 1) & (ci8 == 0), valid_sum, 0.0))
        out_ref[0] = tile


def cross_entropy_mean(logits, labels, ignore_index=IGNORE_INDEX,
                       block_rows=None, block_cols=None):
    """logits: [N, C] (any float dtype), labels: [N] int -> mean CE over non-ignored rows."""
    n, c = logits.shape
    labels2d = labels.reshape(n, 1).astype(jnp.int32)
    itemsize = jnp.dtype(logits.dtype).itemsize
    sublane = max(8, 32 // max(1, itemsize))       # 8 f32, 16 bf16, 32 int8/fp8

    cap = _tpu_vmem_capacity_bytes()
    logits_budget = min(int(cap * 0.4), 48 * 1024 * 1024)   # double-buffered logits stream
    vmem_limit = min(int(cap * 0.75), 96 * 1024 * 1024)

    if block_rows is None:
        block_rows = 512
    if block_cols is None:
        block_cols = 8192 if itemsize <= 2 else 4096
    # sublane/lane alignment of the requested tile (bf16 needs 16-row packing).
    block_rows = max(sublane, (block_rows // sublane) * sublane)
    block_cols = max(128, (block_cols // 128) * 128)
    # Fit the double-buffered logits stream inside the per-generation budget.
    while 2 * block_rows * block_cols * itemsize > logits_budget and block_cols > 512:
        block_cols //= 2
    while 2 * block_rows * block_cols * itemsize > logits_budget and block_rows > sublane:
        block_rows //= 2

    tm = n if n <= block_rows else block_rows
    tv = c if c <= block_cols else block_cols

    # v7x megacore: ensure the "parallel" row axis has >= 2 tiles whenever the
    # vocab axis is actually tiled, so both TensorCores get work.
    if c > tv and pl.cdiv(n, tm) < 2 and n >= 2 * sublane:
        tm = min(n, _align_up(pl.cdiv(n, 2), sublane))

    grid_r = pl.cdiv(n, tm)
    grid_v = pl.cdiv(c, tv)
    rows_ragged = (n % tm) != 0
    cols_ragged = (c % tv) != 0

    kern = functools.partial(_ce_tiled_kernel, ignore_index=ignore_index,
                             n_rows=n, n_cols=c,
                             rows_ragged=rows_ragged, cols_ragged=cols_ragged)
    part = pl.pallas_call(
        kern,
        out_shape=jax.ShapeDtypeStruct((grid_r, 8, 128), jnp.float32),
        grid_spec=pltpu.PrefetchScalarGridSpec(
            num_scalar_prefetch=0,
            grid=(grid_r, grid_v),
            in_specs=[pl.BlockSpec((tm, tv), lambda r, v: (r, v)),
                      pl.BlockSpec((tm, 1), lambda r, v: (r, 0))],
            out_specs=pl.BlockSpec((1, 8, 128), lambda r, v: (r, 0, 0)),
            scratch_shapes=[pltpu.VMEM((tm, 1), jnp.float32),
                            pltpu.VMEM((tm, 1), jnp.float32),
                            pltpu.VMEM((tm, 1), jnp.float32)]),
        compiler_params=pltpu.CompilerParams(
            dimension_semantics=("parallel", "arbitrary"),
            vmem_limit_bytes=vmem_limit),
    )(logits, labels2d)
    # NOTE: all labels ignored -> 0/0 = NaN, same as F.cross_entropy; the module-level
    # non-finite fallback handles it (matches PyTorch semantics).
    return jnp.sum(part[:, 0, 0]) / jnp.sum(part[:, 1, 0])


# ----------------------------------------------------------------------------
# Fused "small heads" kernel: tiny CE heads, BCE-with-logits detail heads and the
# contrastive loss, all in a single pallas_call (launch-bound at small batch).
# ----------------------------------------------------------------------------
def _fused_heads_kernel(*refs, n_ce, n_bce, has_contrastive, ignore_index,
                        inv_temperature):
    n_in = 2 * (n_ce + n_bce) + (3 if has_contrastive else 0)
    ins, outs = refs[:n_in], refs[n_in:]

    # ---- tiny cross-entropy heads (classification, question type) ----------
    for t in range(n_ce):
        logits = ins[2 * t][...].astype(jnp.float32)           # [n, c]
        labels = ins[2 * t + 1][...]                            # [n, 1] int32
        _, c = logits.shape
        col = lax.broadcasted_iota(jnp.int32, (1, c), 1)
        m = jnp.max(logits, axis=-1, keepdims=True)
        lse = m + jnp.log(jnp.sum(jnp.exp(logits - m), axis=-1, keepdims=True))
        correct = jnp.sum(jnp.where(col == labels, logits, 0.0),
                          axis=-1, keepdims=True)
        valid = (labels != ignore_index).astype(jnp.float32)
        outs[t][...] = jnp.reshape(
            jnp.sum((lse - correct) * valid) / jnp.sum(valid), (1, 1))

    # ---- BCE-with-logits detail heads ---------------------------------------
    for t in range(n_bce):
        x = ins[2 * n_ce + 2 * t][...].astype(jnp.float32)
        y = ins[2 * n_ce + 2 * t + 1][...].astype(jnp.float32)
        # numerically stable BCEWithLogits: max(x,0) - x*y + log1p(exp(-|x|))
        loss = jnp.maximum(x, 0.0) - x * y + jnp.log1p(jnp.exp(-jnp.abs(x)))
        outs[n_ce + t][...] = jnp.reshape(jnp.sum(loss) / float(loss.size), (1, 1))

    # ---- contrastive head (small-batch path, fused into the same launch) ----
    if has_contrastive:
        base = 2 * (n_ce + n_bce)
        emb = ins[base][...].astype(jnp.float32)                # [B, Dpad]
        lab_row = ins[base + 1][...]                            # [B, 1] int32
        lab_col = ins[base + 2][...]                            # [1, B] int32
        b = emb.shape[0]

        # L2 normalize with rsqrt (EUP slot) instead of sqrt + divide (VPU).
        sumsq = jnp.sum(emb * emb, axis=1, keepdims=True)
        xn = emb * lax.rsqrt(jnp.maximum(sumsq, 1e-24))
        # Fold 1/temperature into ONE matmul operand: B*D muls instead of B^2.
        lhs = (xn * inv_temperature).astype(jnp.bfloat16)
        rhs = xn.astype(jnp.bfloat16)
        sim = lax.dot_general(lhs, rhs, (((1,), (1,)), ((), ())),
                              preferred_element_type=jnp.float32)

        ri = lax.broadcasted_iota(jnp.int32, (b, b), 0)
        ci = lax.broadcasted_iota(jnp.int32, (b, b), 1)
        match = lab_row == lab_col                              # includes diagonal
        sim = jnp.where(ri == ci, NEG_BIG, sim)                 # masked_fill diagonal
        # Exactly as in the PyTorch reference, the -1e9 diagonal IS in the positive sum.
        pos = jnp.sum(jnp.where(match, sim, 0.0), axis=1, keepdims=True)
        neg_logits = jnp.where(match, NEG_BIG, sim)
        m = jnp.max(neg_logits, axis=1, keepdims=True)
        neg = m + jnp.log(jnp.sum(jnp.exp(neg_logits - m), axis=1, keepdims=True))
        outs[n_ce + n_bce][...] = jnp.reshape(-jnp.mean(pos - neg), (1, 1))


def fused_head_losses(ce_tasks, bce_tasks, contrastive=None, *,
                      ignore_index=IGNORE_INDEX, temperature=0.07):
    """ce_tasks: [(logits [n,c], labels [n])]; bce_tasks: [(logits, targets)];
    contrastive: (embeddings [B,D], labels [B]) or None.  ONE kernel launch total."""
    n_ce, n_bce = len(ce_tasks), len(bce_tasks)
    has_contr = contrastive is not None
    n_out = n_ce + n_bce + (1 if has_contr else 0)
    if n_out == 0:
        return [], [], None

    args = []
    for lg, lb in ce_tasks:
        args += [lg, lb.reshape(-1, 1).astype(jnp.int32)]
    for x, y in bce_tasks:
        args += [x, y]
    if has_contr:
        emb, lab = contrastive
        b, d = emb.shape
        d_pad = _align_up(d, 128)          # lane-align features; zeros are exact
        if d_pad != d:
            emb = jnp.pad(emb, ((0, 0), (0, d_pad - d)))
        args += [emb, lab.reshape(b, 1).astype(jnp.int32),
                 lab.reshape(1, b).astype(jnp.int32)]
        # TODO(synk): tile the [B,B] similarity matrix over a row grid (online logsumexp,
        # same pattern as the CE kernel) once contrastive batches get large enough to
        # exceed VMEM / need both v7x TensorCores.

    kern = functools.partial(_fused_heads_kernel, n_ce=n_ce, n_bce=n_bce,
                             has_contrastive=has_contr, ignore_index=ignore_index,
                             inv_temperature=float(1.0 / temperature))
    outs = pl.pallas_call(
        kern,
        out_shape=tuple(jax.ShapeDtypeStruct((1, 1), jnp.float32)
                        for _ in range(n_out)),
        in_specs=[_vmem_full() for _ in args],
        out_specs=tuple(_vmem_full() for _ in range(n_out)),
    )(*args)
    if not isinstance(outs, (list, tuple)):
        outs = (outs,)
    ce_means = [outs[i][0, 0] for i in range(n_ce)]
    bce_means = [outs[n_ce + i][0, 0] for i in range(n_bce)]
    contr = outs[n_ce + n_bce][0, 0] if has_contr else None
    return ce_means, bce_means, contr


# ----------------------------------------------------------------------------
# Full forward (mirrors MultimodalLoss.forward with use_dynamic_weighting=False)
# ----------------------------------------------------------------------------
def multimodal_loss(model_outputs,
                    classification_labels,
                    language_labels=None,
                    detail_labels=None,
                    attention_mask=None,
                    question_type_labels=None,
                    *,
                    classification_weight=1.0,
                    language_weight=1.0,
                    detail_weight=0.5,
                    contrastive_weight=0.2,
                    ignore_index=IGNORE_INDEX):
    classification_logits = model_outputs.get('logits')
    language_logits = model_outputs.get('response_logits')
    embeddings = model_outputs.get('embeddings')
    detail_logits = model_outputs.get('detail_logits')
    question_type_logits = model_outputs.get('question_type_logits')

    # ---- fuse every small per-head loss into ONE pallas_call ----------------
    ce_tasks, bce_tasks = [], []
    cls_slot = qt_slot = None
    if classification_logits is not None:
        ce_tasks.append((classification_logits, classification_labels))
        cls_slot = len(ce_tasks) - 1
    do_qt = question_type_logits is not None and question_type_labels is not None
    if do_qt:
        ce_tasks.append((question_type_logits, question_type_labels))
        qt_slot = len(ce_tasks) - 1
    have_detail = False
    if detail_logits is not None and detail_labels is not None:
        for detail_type, logits in detail_logits.items():
            if detail_type in detail_labels:
                bce_tasks.append((logits, detail_labels[detail_type]))
                have_detail = True
    contrastive_task = None
    if embeddings is not None and contrastive_weight > 0:
        contrastive_task = (embeddings, classification_labels)

    ce_means, bce_means, contrastive_val = fused_head_losses(
        ce_tasks, bce_tasks, contrastive_task, ignore_index=ignore_index)

    loss_dict = {}
    total_loss = jnp.float32(0.0)

    if classification_logits is not None:
        classification_loss = ce_means[cls_slot]
        loss_dict['classification_loss'] = classification_loss
        total_loss = total_loss + classification_weight * classification_loss

    if language_logits is not None and language_labels is not None:
        if language_logits.ndim == 3:
            vocab_size = language_logits.shape[-1]
            lang_logits_flat = language_logits.reshape(-1, vocab_size)
            lang_labels_flat = language_labels.reshape(-1).astype(jnp.int32)
            if attention_mask is not None:
                keep = attention_mask.reshape(-1).astype(jnp.bool_)
                lang_labels_flat = jnp.where(keep, lang_labels_flat,
                                             jnp.int32(ignore_index))
            language_loss = cross_entropy_mean(lang_logits_flat, lang_labels_flat,
                                               ignore_index)
            loss_dict['language_loss'] = language_loss
            total_loss = total_loss + language_weight * language_loss

    if have_detail:
        avg_detail_loss = jnp.mean(jnp.stack(bce_means))
        loss_dict['detail_loss'] = avg_detail_loss
        total_loss = total_loss + detail_weight * avg_detail_loss

    if do_qt:
        question_type_loss = ce_means[qt_slot]
        loss_dict['question_type_loss'] = question_type_loss
        total_loss = total_loss + detail_weight * question_type_loss

    if contrastive_task is not None:
        loss_dict['contrastive_loss'] = contrastive_val
        total_loss = total_loss + contrastive_weight * contrastive_val

    # non-finite fallback (dummy loss derived from classification logits)
    if classification_logits is not None:
        dummy_loss = 100.0 * jnp.tanh(
            jnp.sum(classification_logits.astype(jnp.float32))
            / classification_logits.size)
    else:
        dummy_loss = jnp.float32(100.0)
    total_loss = jnp.where(jnp.isfinite(total_loss), total_loss, dummy_loss)

    # max-loss rescale: gradient-preserving, matching PyTorch's detached .item() scale
    max_loss = jnp.float32(100.0)
    scale = max_loss / lax.stop_gradient(total_loss)
    total_loss = jnp.where(total_loss > max_loss, scale * total_loss, total_loss)

    loss_dict['total_loss'] = total_loss
    return loss_dict


# ----------------------------------------------------------------------------
# Pure-JAX references (sanity checks for the Pallas path).
# ----------------------------------------------------------------------------
def _ref_ce(logits, labels, ignore_index=IGNORE_INDEX):
    logits = logits.astype(jnp.float32)
    lse = jax.scipy.special.logsumexp(logits, axis=-1)
    safe = jnp.where(labels == ignore_index, 0, labels)
    correct = jnp.take_along_axis(logits, safe[:, None], axis=-1)[:, 0]
    valid = (labels != ignore_index).astype(jnp.float32)
    return jnp.sum((lse - correct) * valid) / jnp.sum(valid)


def _ref_bce(x, y):
    x = x.astype(jnp.float32); y = y.astype(jnp.float32)
    return jnp.mean(jnp.maximum(x, 0) - x * y + jnp.log1p(jnp.exp(-jnp.abs(x))))


def _ref_contrastive(emb, labels, temperature=0.07):
    xn = emb / jnp.maximum(jnp.linalg.norm(emb, axis=1, keepdims=True), 1e-12)
    sim = (xn @ xn.T) / temperature
    match = (labels[:, None] == labels[None, :]).astype(jnp.float32)
    b = emb.shape[0]
    sim = jnp.where(jnp.eye(b, dtype=bool), NEG_BIG, sim)
    pos = jnp.sum(sim * match, axis=1)
    neg = jax.scipy.special.logsumexp(sim * (1 - match) + NEG_BIG * match, axis=1)
    return -jnp.mean(pos - neg)


if __name__ == "__main__":
    key = jax.random.PRNGKey(0)
    B, NUM_CLASSES, S, V, D, NQ, ND = 4, 8, 16, 384, 32, 4, 4
    ks = jax.random.split(key, 12)

    cls_logits = jax.random.normal(ks[0], (B, NUM_CLASSES), jnp.float32)
    cls_labels = jax.random.randint(ks[1], (B,), 0, NUM_CLASSES, jnp.int32)
    lang_logits = jax.random.normal(ks[2], (B, S, V), jnp.float32)
    lang_labels = jax.random.randint(ks[3], (B, S), 0, V, jnp.int32)
    attention_mask = (jax.random.uniform(ks[4], (B, S)) > 0.2).astype(jnp.int32)
    embeddings = jax.random.normal(ks[5], (B, D), jnp.float32)
    detail_logits = {
        'store_name': jax.random.normal(ks[6], (B, ND), jnp.float32),
        'total_amount': jax.random.normal(ks[7], (B, ND), jnp.float32),
    }
    detail_labels = {
        'store_name': (jax.random.uniform(ks[8], (B, ND)) > 0.5).astype(jnp.float32),
        'total_amount': (jax.random.uniform(ks[9], (B, ND)) > 0.5).astype(jnp.float32),
    }
    qt_logits = jax.random.normal(ks[10], (B, NQ), jnp.float32)
    qt_labels = jax.random.randint(ks[11], (B,), 0, NQ, jnp.int32)

    model_outputs = {
        'logits': cls_logits,
        'response_logits': lang_logits,
        'embeddings': embeddings,
        'detail_logits': detail_logits,
        'question_type_logits': qt_logits,
    }

    losses = multimodal_loss(model_outputs, cls_labels,
                             language_labels=lang_labels,
                             detail_labels=detail_labels,
                             attention_mask=attention_mask,
                             question_type_labels=qt_labels)
    losses = jax.tree_util.tree_map(jax.block_until_ready, losses)

    # ---- reference comparisons ----------------------------------------------
    keep = attention_mask.reshape(-1).astype(bool)
    lang_lbl_flat = jnp.where(keep, lang_labels.reshape(-1), IGNORE_INDEX)
    lang_flat = lang_logits.reshape(-1, V)

    ref_cls = _ref_ce(cls_logits, cls_labels)
    ref_lang = _ref_ce(lang_flat, lang_lbl_flat)
    ref_qt = _ref_ce(qt_logits, qt_labels)
    ref_detail = jnp.mean(jnp.stack([_ref_bce(detail_logits[k], detail_labels[k])
                                     for k in detail_logits]))
    ref_contr = _ref_contrastive(embeddings, cls_labels)
    ref_total = (1.0 * ref_cls + 1.0 * ref_lang + 0.5 * ref_detail
                 + 0.5 * ref_qt + 0.2 * ref_contr)
    ref_total = jnp.minimum(ref_total, 100.0)

    np.testing.assert_allclose(np.asarray(losses['classification_loss']),
                               np.asarray(ref_cls), rtol=1e-4, atol=1e-5)
    np.testing.assert_allclose(np.asarray(losses['language_loss']),
                               np.asarray(ref_lang), rtol=1e-4, atol=1e-5)
    np.testing.assert_allclose(np.asarray(losses['question_type_loss']),
                               np.asarray(ref_qt), rtol=1e-4, atol=1e-5)
    np.testing.assert_allclose(np.asarray(losses['detail_loss']),
                               np.asarray(ref_detail), rtol=1e-4, atol=1e-5)
    np.testing.assert_allclose(np.asarray(losses['contrastive_loss']),
                               np.asarray(ref_contr), rtol=2e-3, atol=1e-3)
    np.testing.assert_allclose(np.asarray(losses['total_loss']),
                               np.asarray(ref_total), rtol=1e-3, atol=1e-3)

    # ---- exercise the tiled online-softmax CE paths explicitly --------------
    # (a) exact-division tiling (no mask work emitted)
    ce_a = cross_entropy_mean(lang_flat, lang_lbl_flat, block_rows=16, block_cols=128)
    # (b) ragged rows + ragged cols (static-flag mask specialization)
    ce_b = cross_entropy_mean(lang_flat, lang_lbl_flat, block_rows=24, block_cols=256)
    # (c) forced >=2 row tiles for megacore when only the vocab axis is tiled
    ce_c = cross_entropy_mean(lang_flat, lang_lbl_flat, block_rows=512, block_cols=128)
    # (d) bf16-native DMA with 16-row sublane-aligned tiles (compare vs bf16-rounded ref)
    lang_bf16 = lang_flat.astype(jnp.bfloat16)
    ce_d = cross_entropy_mean(lang_bf16, lang_lbl_flat, block_rows=24, block_cols=256)
    ref_bf16 = _ref_ce(lang_bf16.astype(jnp.float32), lang_lbl_flat)
    jax.block_until_ready((ce_a, ce_b, ce_c, ce_d))
    np.testing.assert_allclose(np.asarray(ce_a), np.asarray(ref_lang), rtol=1e-4, atol=1e-5)
    np.testing.assert_allclose(np.asarray(ce_b), np.asarray(ref_lang), rtol=1e-4, atol=1e-5)
    np.testing.assert_allclose(np.asarray(ce_c), np.asarray(ref_lang), rtol=1e-4, atol=1e-5)
    np.testing.assert_allclose(np.asarray(ce_d), np.asarray(ref_bf16), rtol=1e-4, atol=1e-5)

    print("KERNEL_OK")
</pallas_src>

<mosaic_0001>
module attributes {stable_mosaic.version = 11 : i64} {
  func.func @_fused_heads_kernel(%arg0: memref<4x8xf32, #tpu.memory_space<vmem>>, %arg1: memref<4x1xi32, #tpu.memory_space<vmem>>, %arg2: memref<4x4xf32, #tpu.memory_space<vmem>>, %arg3: memref<4x1xi32, #tpu.memory_space<vmem>>, %arg4: memref<4x4xf32, #tpu.memory_space<vmem>>, %arg5: memref<4x4xf32, #tpu.memory_space<vmem>>, %arg6: memref<4x4xf32, #tpu.memory_space<vmem>>, %arg7: memref<4x4xf32, #tpu.memory_space<vmem>>, %arg8: memref<4x128xf32, #tpu.memory_space<vmem>>, %arg9: memref<4x1xi32, #tpu.memory_space<vmem>>, %arg10: memref<1x4xi32, #tpu.memory_space<vmem>>, %arg11: memref<1x1xf32, #tpu.memory_space<vmem>>, %arg12: memref<1x1xf32, #tpu.memory_space<vmem>>, %arg13: memref<1x1xf32, #tpu.memory_space<vmem>>, %arg14: memref<1x1xf32, #tpu.memory_space<vmem>>, %arg15: memref<1x1xf32, #tpu.memory_space<vmem>>) attributes {dimension_semantics = [], scalar_prefetch = 0 : i64, scratch_operands = 0 : i64, tpu.core_type = #tpu.core_type<tc>} {
    %c0 = arith.constant 0 : index
    %c0_0 = arith.constant 0 : index
    %0 = vector.load %arg0[%c0, %c0_0] : memref<4x8xf32, #tpu.memory_space<vmem>>, vector<4x8xf32>
    %c0_1 = arith.constant 0 : index
    %c0_2 = arith.constant 0 : index
    %1 = vector.load %arg1[%c0_1, %c0_2] : memref<4x1xi32, #tpu.memory_space<vmem>>, vector<4x1xi32>
    %2 = tpu.iota {dimensions = array<i32: 1>} : vector<1x8xi32>
    %cst = arith.constant dense<0xFF800000> : vector<4xf32>
    %3 = vector.multi_reduction <maximumf>, %0, %cst [1] : vector<4x8xf32> to vector<4xf32>
    %4 = vector.shape_cast %3 : vector<4xf32> to vector<4x1xf32>
    %5 = vector.broadcast %4 : vector<4x1xf32> to vector<4x8xf32>
    %6 = arith.subf %0, %5 : vector<4x8xf32>
    %7 = math.exp %6 : vector<4x8xf32>
    %cst_3 = arith.constant dense<0.000000e+00> : vector<4xf32>
    %8 = vector.multi_reduction <add>, %7, %cst_3 [1] : vector<4x8xf32> to vector<4xf32>
    %9 = vector.shape_cast %8 : vector<4xf32> to vector<4x1xf32>
    %10 = math.log %9 : vector<4x1xf32>
    %11 = arith.addf %4, %10 : vector<4x1xf32>
    %12 = vector.broadcast %2 : vector<1x8xi32> to vector<4x8xi32>
    %13 = vector.broadcast %1 : vector<4x1xi32> to vector<4x8xi32>
    %14 = arith.cmpi eq, %12, %13 : vector<4x8xi32>
    %cst_4 = arith.constant 0.000000e+00 : f32
    %15 = vector.broadcast %cst_4 : f32 to vector<4x8xf32>
    %16 = arith.select %14, %0, %15 : vector<4x8xi1>, vector<4x8xf32>
    %cst_5 = arith.constant dense<0.000000e+00> : vector<4xf32>
    %17 = vector.multi_reduction <add>, %16, %cst_5 [1] : vector<4x8xf32> to vector<4xf32>
    %18 = vector.shape_cast %17 : vector<4xf32> to vector<4x1xf32>
    %c-100_i32 = arith.constant -100 : i32
    %19 = vector.broadcast %c-100_i32 : i32 to vector<4x1xi32>
    %20 = arith.cmpi ne, %1, %19 : vector<4x1xi32>
    %21 = arith.extui %20 : vector<4x1xi1> to vector<4x1xi32>
    %22 = arith.sitofp %21 : vector<4x1xi32> to vector<4x1xf32>
    %23 = arith.subf %11, %18 : vector<4x1xf32>
    %24 = arith.mulf %23, %22 : vector<4x1xf32>
    %25 = vector.shape_cast %24 : vector<4x1xf32> to vector<1x4x1xf32>
    %cst_6 = arith.constant dense<0.000000e+00> : vector<1xf32>
    %26 = vector.multi_reduction <add>, %25, %cst_6 [1, 2] : vector<1x4x1xf32> to vector<1xf32>
    %27 = vector.shape_cast %26 : vector<1xf32> to vector<1x1x1xf32>
    %28 = vector.extract %27[0, 0, 0] : f32 from vector<1x1x1xf32>
    %29 = vector.shape_cast %22 : vector<4x1xf32> to vector<1x4x1xf32>
    %cst_7 = arith.constant dense<0.000000e+00> : vector<1xf32>
    %30 = vector.multi_reduction <add>, %29, %cst_7 [1, 2] : vector<1x4x1xf32> to vector<1xf32>
    %31 = vector.shape_cast %30 : vector<1xf32> to vector<1x1x1xf32>
    %32 = vector.extract %31[0, 0, 0] : f32 from vector<1x1x1xf32>
    %33 = arith.divf %28, %32 : f32
    %34 = vector.broadcast %33 : f32 to vector<1x1xf32>
    %c0_8 = arith.constant 0 : index
    %c0_9 = arith.constant 0 : index
    %35 = vector.load %arg11[%c0_8, %c0_9] : memref<1x1xf32, #tpu.memory_space<vmem>>, vector<1x1xf32>
    tpu.vector_store %arg11[%c0_8, %c0_9], %34 {strides = array<i32>} : memref<1x1xf32, #tpu.memory_space<vmem>>, vector<1x1xf32>,
    %c0_10 = arith.constant 0 : index
    %c0_11 = arith.constant 0 : index
    %36 = vector.load %arg2[%c0_10, %c0_11] : memref<4x4xf32, #tpu.memory_space<vmem>>, vector<4x4xf32>
    %c0_12 = arith.constant 0 : index
    %c0_13 = arith.constant 0 : index
    %37 = vector.load %arg3[%c0_12, %c0_13] : memref<4x1xi32, #tpu.memory_space<vmem>>, vector<4x1xi32>
    %38 = tpu.iota {dimensions = array<i32: 1>} : vector<1x4xi32>
    %cst_14 = arith.constant dense<0xFF800000> : vector<4xf32>
    %39 = vector.multi_reduction <maximumf>, %36, %cst_14 [1] : vector<4x4xf32> to vector<4xf32>
    %40 = vector.shape_cast %39 : vector<4xf32> to vector<4x1xf32>
    %41 = vector.broadcast %40 : vector<4x1xf32> to vector<4x4xf32>
    %42 = arith.subf %36, %41 : vector<4x4xf32>
    %43 = math.exp %42 : vector<4x4xf32>
    %cst_15 = arith.constant dense<0.000000e+00> : vector<4xf32>
    %44 = vector.multi_reduction <add>, %43, %cst_15 [1] : vector<4x4xf32> to vector<4xf32>
    %45 = vector.shape_cast %44 : vector<4xf32> to vector<4x1xf32>
    %46 = math.log %45 : vector<4x1xf32>
    %47 = arith.addf %40, %46 : vector<4x1xf32>
    %48 = vector.broadcast %38 : vector<1x4xi32> to vector<4x4xi32>
    %49 = vector.broadcast %37 : vector<4x1xi32> to vector<4x4xi32>
    %50 = arith.cmpi eq, %48, %49 : vector<4x4xi32>
    %cst_16 = arith.constant 0.000000e+00 : f32
    %51 = vector.broadcast %cst_16 : f32 to vector<4x4xf32>
    %52 = arith.select %50, %36, %51 : vector<4x4xi1>, vector<4x4xf32>
    %cst_17 = arith.constant dense<0.000000e+00> : vector<4xf32>
    %53 = vector.multi_reduction <add>, %52, %cst_17 [1] : vector<4x4xf32> to vector<4xf32>
    %54 = vector.shape_cast %53 : vector<4xf32> to vector<4x1xf32>
    %c-100_i32_18 = arith.constant -100 : i32
    %55 = vector.broadcast %c-100_i32_18 : i32 to vector<4x1xi32>
    %56 = arith.cmpi ne, %37, %55 : vector<4x1xi32>
    %57 = arith.extui %56 : vector<4x1xi1> to vector<4x1xi32>
    %58 = arith.sitofp %57 : vector<4x1xi32> to vector<4x1xf32>
    %59 = arith.subf %47, %54 : vector<4x1xf32>
    %60 = arith.mulf %59, %58 : vector<4x1xf32>
    %61 = vector.shape_cast %60 : vector<4x1xf32> to vector<1x4x1xf32>
    %cst_19 = arith.constant dense<0.000000e+00> : vector<1xf32>
    %62 = vector.multi_reduction <add>, %61, %cst_19 [1, 2] : vector<1x4x1xf32> to vector<1xf32>
    %63 = vector.shape_cast %62 : vector<1xf32> to vector<1x1x1xf32>
    %64 = vector.extract %63[0, 0, 0] : f32 from vector<1x1x1xf32>
    %65 = vector.shape_cast %58 : vector<4x1xf32> to vector<1x4x1xf32>
    %cst_20 = arith.constant dense<0.000000e+00> : vector<1xf32>
    %66 = vector.multi_reduction <add>, %65, %cst_20 [1, 2] : vector<1x4x1xf32> to vector<1xf32>
    %67 = vector.shape_cast %66 : vector<1xf32> to vector<1x1x1xf32>
    %68 = vector.extract %67[0, 0, 0] : f32 from vector<1x1x1xf32>
    %69 = arith.divf %64, %68 : f32
    %70 = vector.broadcast %69 : f32 to vector<1x1xf32>
    %c0_21 = arith.constant 0 : index
    %c0_22 = arith.constant 0 : index
    %71 = vector.load %arg12[%c0_21, %c0_22] : memref<1x1xf32, #tpu.memory_space<vmem>>, vector<1x1xf32>
    tpu.vector_store %arg12[%c0_21, %c0_22], %70 {strides = array<i32>} : memref<1x1xf32, #tpu.memory_space<vmem>>, vector<1x1xf32>,
    %c0_23 = arith.constant 0 : index
    %c0_24 = arith.constant 0 : index
    %72 = vector.load %arg4[%c0_23, %c0_24] : memref<4x4xf32, #tpu.memory_space<vmem>>, vector<4x4xf32>
    %c0_25 = arith.constant 0 : index
    %c0_26 = arith.constant 0 : index
    %73 = vector.load %arg5[%c0_25, %c0_26] : memref<4x4xf32, #tpu.memory_space<vmem>>, vector<4x4xf32>
    %cst_27 = arith.constant 0.000000e+00 : f32
    %74 = vector.broadcast %cst_27 : f32 to vector<4x4xf32>
    %75 = arith.maximumf %72, %74 : vector<4x4xf32>
    %76 = arith.mulf %72, %73 : vector<4x4xf32>
    %77 = arith.subf %75, %76 : vector<4x4xf32>
    %78 = math.absf %72 : vector<4x4xf32>
    %cst_28 = arith.constant 0.000000e+00 : f32
    %79 = vector.broadcast %cst_28 : f32 to vector<4x4xf32>
    %80 = arith.subf %79, %78 : vector<4x4xf32>
    %81 = math.exp %80 : vector<4x4xf32>
    %82 = math.log1p %81 : vector<4x4xf32>
    %83 = arith.addf %77, %82 : vector<4x4xf32>
    %84 = vector.shape_cast %83 : vector<4x4xf32> to vector<1x4x4xf32>
    %cst_29 = arith.constant dense<0.000000e+00> : vector<1xf32>
    %85 = vector.multi_reduction <add>, %84, %cst_29 [1, 2] : vector<1x4x4xf32> to vector<1xf32>
    %86 = vector.shape_cast %85 : vector<1xf32> to vector<1x1x1xf32>
    %87 = vector.extract %86[0, 0, 0] : f32 from vector<1x1x1xf32>
    %cst_30 = arith.constant 1.600000e+01 : f32
    %88 = arith.divf %87, %cst_30 : f32
    %89 = vector.broadcast %88 : f32 to vector<1x1xf32>
    %c0_31 = arith.constant 0 : index
    %c0_32 = arith.constant 0 : index
    %90 = vector.load %arg13[%c0_31, %c0_32] : memref<1x1xf32, #tpu.memory_space<vmem>>, vector<1x1xf32>
    tpu.vector_store %arg13[%c0_31, %c0_32], %89 {strides = array<i32>} : memref<1x1xf32, #tpu.memory_space<vmem>>, vector<1x1xf32>,
    %c0_33 = arith.constant 0 : index
    %c0_34 = arith.constant 0 : index
    %91 = vector.load %arg6[%c0_33, %c0_34] : memref<4x4xf32, #tpu.memory_space<vmem>>, vector<4x4xf32>
    %c0_35 = arith.constant 0 : index
    %c0_36 = arith.constant 0 : index
    %92 = vector.load %arg7[%c0_35, %c0_36] : memref<4x4xf32, #tpu.memory_space<vmem>>, vector<4x4xf32>
    %cst_37 = arith.constant 0.000000e+00 : f32
    %93 = vector.broadcast %cst_37 : f32 to vector<4x4xf32>
    %94 = arith.maximumf %91, %93 : vector<4x4xf32>
    %95 = arith.mulf %91, %92 : vector<4x4xf32>
    %96 = arith.subf %94, %95 : vector<4x4xf32>
    %97 = math.absf %91 : vector<4x4xf32>
    %cst_38 = arith.constant 0.000000e+00 : f32
    %98 = vector.broadcast %cst_38 : f32 to vector<4x4xf32>
    %99 = arith.subf %98, %97 : vector<4x4xf32>
    %100 = math.exp %99 : vector<4x4xf32>
    %101 = math.log1p %100 : vector<4x4xf32>
    %102 = arith.addf %96, %101 : vector<4x4xf32>
    %103 = vector.shape_cast %102 : vector<4x4xf32> to vector<1x4x4xf32>
    %cst_39 = arith.constant dense<0.000000e+00> : vector<1xf32>
    %104 = vector.multi_reduction <add>, %103, %cst_39 [1, 2] : vector<1x4x4xf32> to vector<1xf32>
    %105 = vector.shape_cast %104 : vector<1xf32> to vector<1x1x1xf32>
    %106 = vector.extract %105[0, 0, 0] : f32 from vector<1x1x1xf32>
    %cst_40 = arith.constant 1.600000e+01 : f32
    %107 = arith.divf %106, %cst_40 : f32
    %108 = vector.broadcast %107 : f32 to vector<1x1xf32>
    %c0_41 = arith.constant 0 : index
    %c0_42 = arith.constant 0 : index
    %109 = vector.load %arg14[%c0_41, %c0_42] : memref<1x1xf32, #tpu.memory_space<vmem>>, vector<1x1xf32>
    tpu.vector_store %arg14[%c0_41, %c0_42], %108 {strides = array<i32>} : memref<1x1xf32, #tpu.memory_space<vmem>>, vector<1x1xf32>,
    %c0_43 = arith.constant 0 : index
    %c0_44 = arith.constant 0 : index
    %110 = vector.load %arg8[%c0_43, %c0_44] : memref<4x128xf32, #tpu.memory_space<vmem>>, vector<4x128xf32>
    %c0_45 = arith.constant 0 : index
    %c0_46 = arith.constant 0 : index
    %111 = vector.load %arg9[%c0_45, %c0_46] : memref<4x1xi32, #tpu.memory_space<vmem>>, vector<4x1xi32>
    %c0_47 = arith.constant 0 : index
    %c0_48 = arith.constant 0 : index
    %112 = vector.load %arg10[%c0_47, %c0_48] : memref<1x4xi32, #tpu.memory_space<vmem>>, vector<1x4xi32>
    %113 = arith.mulf %110, %110 : vector<4x128xf32>
    %cst_49 = arith.constant dense<0.000000e+00> : vector<4xf32>
    %114 = vector.multi_reduction <add>, %113, %cst_49 [1] : vector<4x128xf32> to vector<4xf32>
    %115 = vector.shape_cast %114 : vector<4xf32> to vector<4x1xf32>
    %cst_50 = arith.constant 1.000000e-24 : f32
    %116 = vector.broadcast %cst_50 : f32 to vector<4x1xf32>
    %117 = arith.maximumf %115, %116 : vector<4x1xf32>
    %118 = math.rsqrt %117 : vector<4x1xf32>
    %119 = vector.broadcast %118 : vector<4x1xf32> to vector<4x128xf32>
    %120 = arith.mulf %110, %119 : vector<4x128xf32>
    %cst_51 = arith.constant 14.2857141 : f32
    %121 = vector.broadcast %cst_51 : f32 to vector<4x128xf32>
    %122 = arith.mulf %120, %121 : vector<4x128xf32>
    %123 = arith.truncf %122 : vector<4x128xf32> to vector<4x128xbf16>
    %124 = arith.truncf %120 : vector<4x128xf32> to vector<4x128xbf16>
    %cst_52 = arith.constant dense<0.000000e+00> : vector<4x4xf32>
    %125 = tpu.matmul %123, %124, %cst_52 {dimension_numbers = #tpu.dot_dimension_numbers<[1], [1], [0], [0], [0, 0, 1, 0], [], []>} : vector<4x128xbf16>, vector<4x128xbf16>, vector<4x4xf32> -> vector<4x4xf32>
    %126 = tpu.iota {dimensions = array<i32: 0>} : vector<4x4xi32>
    %127 = tpu.iota {dimensions = array<i32: 1>} : vector<4x4xi32>
    %128 = vector.broadcast %111 : vector<4x1xi32> to vector<4x4xi32>
    %129 = vector.broadcast %112 : vector<1x4xi32> to vector<4x4xi32>
    %130 = arith.cmpi eq, %128, %129 : vector<4x4xi32>
    %131 = arith.cmpi eq, %126, %127 : vector<4x4xi32>
    %cst_53 = arith.constant -1.000000e+09 : f32
    %132 = vector.broadcast %cst_53 : f32 to vector<4x4xf32>
    %133 = arith.select %131, %132, %125 : vector<4x4xi1>, vector<4x4xf32>
    %cst_54 = arith.constant 0.000000e+00 : f32
    %134 = vector.broadcast %cst_54 : f32 to vector<4x4xf32>
    %135 = arith.select %130, %133, %134 : vector<4x4xi1>, vector<4x4xf32>
    %cst_55 = arith.constant dense<0.000000e+00> : vector<4xf32>
    %136 = vector.multi_reduction <add>, %135, %cst_55 [1] : vector<4x4xf32> to vector<4xf32>
    %137 = vector.shape_cast %136 : vector<4xf32> to vector<4x1xf32>
    %cst_56 = arith.constant -1.000000e+09 : f32
    %138 = vector.broadcast %cst_56 : f32 to vector<4x4xf32>
    %139 = arith.select %130, %138, %133 : vector<4x4xi1>, vector<4x4xf32>
    %cst_57 = arith.constant dense<0xFF800000> : vector<4xf32>
    %140 = vector.multi_reduction <maximumf>, %139, %cst_57 [1] : vector<4x4xf32> to vector<4xf32>
    %141 = vector.shape_cast %140 : vector<4xf32> to vector<4x1xf32>
    %142 = vector.broadcast %141 : vector<4x1xf32> to vector<4x4xf32>
    %143 = arith.subf %139, %142 : vector<4x4xf32>
    %144 = math.exp %143 : vector<4x4xf32>
    %cst_58 = arith.constant dense<0.000000e+00> : vector<4xf32>
    %145 = vector.multi_reduction <add>, %144, %cst_58 [1] : vector<4x4xf32> to vector<4xf32>
    %146 = vector.shape_cast %145 : vector<4xf32> to vector<4x1xf32>
    %147 = math.log %146 : vector<4x1xf32>
    %148 = arith.addf %141, %147 : vector<4x1xf32>
    %149 = arith.subf %137, %148 : vector<4x1xf32>
    %150 = vector.shape_cast %149 : vector<4x1xf32> to vector<1x4x1xf32>
    %cst_59 = arith.constant dense<0.000000e+00> : vector<1xf32>
    %151 = vector.multi_reduction <add>, %150, %cst_59 [1, 2] : vector<1x4x1xf32> to vector<1xf32>
    %152 = vector.shape_cast %151 : vector<1xf32> to vector<1x1x1xf32>
    %153 = vector.extract %152[0, 0, 0] : f32 from vector<1x1x1xf32>
    %cst_60 = arith.constant 4.000000e+00 : f32
    %154 = arith.divf %153, %cst_60 : f32
    %cst_61 = arith.constant 0.000000e+00 : f32
    %155 = arith.subf %cst_61, %154 : f32
    %156 = vector.broadcast %155 : f32 to vector<1x1xf32>
    %c0_62 = arith.constant 0 : index
    %c0_63 = arith.constant 0 : index
    %157 = vector.load %arg15[%c0_62, %c0_63] : memref<1x1xf32, #tpu.memory_space<vmem>>, vector<1x1xf32>
    tpu.vector_store %arg15[%c0_62, %c0_63], %156 {strides = array<i32>} : memref<1x1xf32, #tpu.memory_space<vmem>>, vector<1x1xf32>,
    return
  }
}

</mosaic_0001>

<bundles_post_ra>
// kernel: tpu_custom_call.1
= control target key start
LH: loop header
LB: loop body
LE: loop exit
PB: predicated region body
PF: predicated region fallthrough
CT: control target
= control target key end

     0   :  { %21 = vsyncpa [#allocation3], 0  ;;  %s753_s0 = inlined_call_operand.vmem [shape: f32[4,8], index: 0, kind: input, shape index: {}]   ;;  %s754_s1 = inlined_call_operand.vmem [shape: s32[4,1], index: 1, kind: input, shape index: {}]   ;;  %s755_s2 = inlined_call_operand.vmem [shape: f32[4,4], index: 2, kind: input, shape index: {}]   ;;  %s756_s3 = inlined_call_operand.vmem [shape: s32[4,1], index: 3, kind: input, shape index: {}]   ;;  %s757_s4 = inlined_call_operand.vmem [shape: f32[4,4], index: 4, kind: input, shape index: {}]   ;;  %s758_s5 = inlined_call_operand.vmem [shape: f32[4,4], index: 5, kind: input, shape index: {}]   ;;  %s759_s6 = inlined_call_operand.vmem [shape: f32[4,4], index: 6, kind: input, shape index: {}]   ;;  %s760_s7 = inlined_call_operand.vmem [shape: f32[4,4], index: 7, kind: input, shape index: {}]   ;;  %s761_s8 = inlined_call_operand.vmem [shape: f32[4,128], index: 8, kind: input, shape index: {}]   ;;  %s762_s9 = inlined_call_operand.vmem [shape: s32[4,1], index: 9, kind: input, shape index: {}]   ;;  %s763_s10 = inlined_call_operand.vmem [shape: s32[1,4], index: 10, kind: input, shape index: {}]   ;;  %s764_s11 = inlined_call_operand.hbm [shape: f32[1,1], index: 11, kind: output, shape index: {0}]   ;;  %s765_s12 = inlined_call_operand.hbm [shape: f32[1,1], index: 12, kind: output, shape index: {1}]   ;;  %s766_s13 = inlined_call_operand.hbm [shape: f32[1,1], index: 13, kind: output, shape index: {2}]   ;;  %s767_s14 = inlined_call_operand.hbm [shape: f32[1,1], index: 14, kind: output, shape index: {3}]   ;;  %s768_s15 = inlined_call_operand.hbm [shape: f32[1,1], index: 15, kind: output, shape index: {4}]  }
   0x1   :  { %22 = vsyncpa [#allocation5], 0  ;;  %v227_v0 = vld [vmem:[%s761_s8] sm:$0xf]  ;;  %vm231_vm0 = vcmask 1043456   ;;  %vm51_vm1 = vcmask 60416  }
   0x2   :  { %v230_v1 = vmul.f32 %v227_v0, %v227_v0  ;;  %v660_v2 = vld [vmem:[%s754_s1] sm:$0xf]  ;;  %v566_v4 = vmov 0  }
   0x3   :  { %v47_v3 = vld [vmem:[%s753_s0] sm:$0xf]  ;;  %432 = vset.pattern.permute.xlu1 %v566_v4  ;;  %433 = vset.pattern.permute.xlu0 %v566_v4 }
   0x4   :  { %23 = vsyncpa [#allocation8], 0  ;;  %v232_v5 = vsel %vm231_vm0, %v230_v1, 0.0  ;;  %65 = vperm.xlu1 %432, %v660_v2   ;;  %v567_v6 = vmov 0.0   ;;  %v52_v7 = vsel %vm51_vm1, %v47_v3, -inf  ;;  %vm107_vm2 = vcmask 27648  }
   0x5   :  { %400 = vmatprep.subr.bf16.mxu0 %v567_v6  ;;  %233 = vadd.xlane.f32.xlu0 %v232_v5  ;;  %v228_v8 = vld [vmem:[%s762_s9] sm:$0xf]  ;;  %vm568_vm3 = vmmov 0   ;;  %v49_v11 = vlaneseq  ;;  %vm72_vm6 = vcmp.ne.s32.totalorder %v660_v2, 4294967196  ;;  %vm77_vm7 = vcmask 3072   ;;  %s569_s20 = smov [#allocation2]  }
   0x6   :  { %v105_v9 = vld [vmem:[%s755_s2] sm:$0xf]  ;;  %402 = vmatprep.mubr.msk.bf16.mxu0 %vm568_vm3, %v567_v6  ;;  %v395_v43 = vsel %vm72_vm6, 1.0, %v567_v6  ;;  %vm103_vm13 = vcmask 0   ;;  %s333_s21 = sshll.u32 %s569_s20, 4  ;;  %s334_s21 = int_to_ptr.vmem [resolvable:$true] %s333_s21 }
   0x7   :  { %v108_v10 = vsel %vm107_vm2, %v105_v9, -inf  ;;  %v50_v12 = vand.u32 127, %v49_v11  ;;  %v106_v30 = vld [vmem:[%s756_s3] sm:$0xf]  ;;  %v88_v47 = vsel %vm77_vm7, %v395_v43, 0.0  ;;  %v282_v48 = vshrl.u32 %v49_v11, 7  ;;  %p465_p1 = scmp.lt.s32.totalorder %s334_s21, %s334_s21 }
   0x8   :  { %v397_v49 = vld [vmem:[%s763_s10] ss:$0 sm:$0xff]  ;;  %vm128_vm10 = vcmp.ne.s32.totalorder %v106_v30, 4294967196  ;;  %s460_s22 = scalar_lea.vmem %s334_s21, 16  ;;  %s464_s23 = scalar_lea.vmem %s334_s21, 32 }
   0x9   :  { %53 = vmax.xlane.f32.xlu0 %v52_v7  ;;  %vm291_vm8 = vcmp.eq.s32.totalorder %v282_v48, %v50_v12  ;;  %v396_v59 = vsel %vm128_vm10, 1.0, %v567_v6  ;;  %v194_v48 = vld [vmem:[%s760_s7] sm:$0xf]  ;;  %p461_p0 = scmp.ne.s32.totalorder %s334_s21, %s460_s22  ;;  %p466_p2 = scmp.lt.s32.totalorder %s464_s23, %s460_s22 }
   0xa   :  { %v143_v60 = vsel %vm77_vm7, %v396_v59, 0.0 }
   0xb   :  { %p467_p3 = por %p466_p2, %p465_p1 }
   0xd   :  { %p468_p4 = pnand %p467_p3, %p461_p0 }
  0x1f   :  { %284 = vperm.xlu0 %433, %v228_v8  }
  0x28   :  { %109 = vmax.xlane.f32.xlu1 %v108_v10 }
  0x7f   :  { %v66_v13 = vpop.permute.xlu1 %65 }
  0x80   :  { %vm67_vm4 = vcmp.eq.s32.totalorder %v50_v12, %v66_v13  ;;  %v159_v13 = vld [vmem:[%s757_s4] sm:$0xf] }
  0x81   :  { %v68_v14 = vsel %vm67_vm4, %v47_v3, 0.0 }
  0x82   :  { %v69_v15 = vsel %vm51_vm1, %v68_v14, 0.0  ;;  %v164_v14 = vand.u32 2147483647, %v159_v13 }
  0x83   :  { %70 = vadd.xlane.f32.xlu0 %v69_v15 }
  0x8e   :  { %v234_v16 = vpop.xlane.xlu0 %233 }
  0x8f   :  { %v235_v17 = vmax.f32 %v234_v16, 1e-24 }
  0x91   :  { %434 = vrsqrt.f32 %v235_v17  ;;  %v165_v17 = vsub.f32 0.0, %v164_v14 }
  0x92   :  { %v54_v18 = vpop.xlane.xlu0 %53 }
  0x93   :  { %v55_v19 = vsub.f32 %v47_v3, %v54_v18 }
  0x95   :  { %v56_v20 = vmul.f32 1.442695, %v55_v19 }
  0x97   :  { %436 = vpow2.f32 %v56_v20  ;;  %v166_v20 = vmul.f32 1.442695, %v165_v17 }
  0x9a   :  { %v285_v38 = vpop.permute.xlu0 %284 }
  0x9b   :  { %vm290_vm9 = vcmp.eq.s32.totalorder %v285_v38, %v397_v49  ;;  %v160_v38 = vld [vmem:[%s758_s5] sm:$0xf] }
  0x9e   :  { %v435_v21 = vpop.eup %434 }
  0x9f   :  { %v237_v22 = vmul.f32 %v435_v21, %v227_v0 }
  0xa1   :  { %v240_v23 = vpack.c.bf16 %v237_v22, %v237_v22  ;;  %v238_v25 = vmul.f32 14.285714, %v237_v22 }
  0xa3   :  { %401 = vmatpush3.bf16.xpose.msra.mxu0 %v240_v23  ;;  %v239_v27 = vpack.c.bf16 %v238_v25, %v238_v25 }
  0xa4   :  { %v437_v24 = vpop.eup %436 }
  0xa5   :  { %v58_v26 = vsel %vm51_vm1, %v437_v24, 0.0 }
  0xa6   :  { %59 = vadd.xlane.f32.xlu1 %v58_v26 }
  0xaa   :  { %403 = vmatmul.mubr.bf16.vlgmr.msra.gmra.mxu0 %v239_v27 }
  0xb1   :  { %v678_v28 = vpop.xlane.xlu1 %109 }
  0xb2   :  { %v111_v29 = vsub.f32 %v105_v9, %v678_v28 }
  0xb4   :  { %v112_v31 = vmul.f32 1.442695, %v111_v29 }
  0xb6   :  { %438 = vpow2.f32 %v112_v31 }
  0xb7   :  { %121 = vperm.xlu1 %432, %v106_v30  }
  0xc3   :  { %v439_v32 = vpop.eup %438 }
  0xc4   :  { %v114_v33 = vsel %vm107_vm2, %v439_v32, 0.0 }
  0xc5   :  { %115 = vadd.xlane.f32.xlu0 %v114_v33 }
 0x10c   :  { %v71_v41 = vpop.xlane.xlu0 %70 }
 0x12f   :  { %v60_v34 = vpop.xlane.xlu1 %59 }
 0x130   :  { %440 = vlog2.f32 %v60_v34 }
 0x133   :  { %v122_v35 = vpop.permute.xlu1 %121 }
 0x134   :  { %vm123_vm5 = vcmp.eq.s32.totalorder %v50_v12, %v122_v35 }
 0x135   :  { %v124_v36 = vsel %vm123_vm5, %v105_v9, 0.0 }
 0x136   :  { %v125_v37 = vsel %vm107_vm2, %v124_v36, 0.0 }
 0x137   :  { %126 = vadd.xlane.f32.xlu0 %v125_v37 }
 0x13d   :  { %v441_v39 = vpop.eup %440 }
 0x13e   :  { %v62_v40 = vmul.f32 0.6931472, %v441_v39 }
 0x140   :  { %v63_v42 = vadd.f32 %v62_v40, %v54_v18  ;;  %v193_v18 = vld [vmem:[%s759_s6] sm:$0xf]  ;;  %v161_v40 = vmax.f32 %v159_v13, 0.0 }
 0x141   :  { %v198_v21 = vand.u32 2147483647, %v193_v18 }
 0x142   :  { %v75_v44 = vsub.f32 %v63_v42, %v71_v41  ;;  %v162_v41 = vmul.f32 %v160_v38, %v159_v13 }
 0x143   :  { %v199_v22 = vsub.f32 0.0, %v198_v21 }
 0x144   :  { %v76_v45 = vmul.f32 %v395_v43, %v75_v44 }
 0x145   :  { %v200_v24 = vmul.f32 1.442695, %v199_v22 }
 0x146   :  { %v78_v46 = vsel %vm77_vm7, %v76_v45, 0.0 }
 0x147   :  { %79 = vadd.xlane.f32.xlu0 %v78_v46  ;;  %v163_v46 = vsub.f32 %v161_v40, %v162_v41 }
 0x14b   :  { %89 = vadd.xlane.f32.xlu0 %v88_v47 }
 0x14e   :  { %v116_v61 = vpop.xlane.xlu0 %115 }
 0x14f   :  { %442 = vlog2.f32 %v116_v61 }
 0x15c   :  { %v443_v23 = vpop.eup %442 }
 0x15d   :  { %v118_v25 = vmul.f32 0.6931472, %v443_v23 }
 0x15f   :  { %v119_v26 = vadd.f32 %v118_v25, %v678_v28 }
 0x16a   :  { %v275_v50 = vpop.f32.mrf.mxu0 }
 0x16b   :  { %v292_v51 = vsel %vm291_vm8, -1e+09, %v275_v50 }
 0x16c   :  { %v404_v52 = vpop.f32.mrf.mxu0  ;;  %v297_v53 = vsel %vm290_vm9, -1e+09, %v292_v51  ;;  %v293_v54 = vsel %vm290_vm9, %v292_v51, 0.0 }
 0x16d   :  { %v298_v55 = vsel %vm107_vm2, %v297_v53, -inf  ;;  %v294_v56 = vsel %vm107_vm2, %v293_v54, 0.0  ;;  %v195_v52 = vmax.f32 %v193_v18, 0.0 }
 0x16e   :  { %v278_v57 = vpop.f32.mrf.mxu0  ;;  %299 = vmax.xlane.f32.xlu1 %v298_v55  ;;  %295 = vadd.xlane.f32.xlu0 %v294_v56 }
 0x170   :  { %v405_v58 = vpop.f32.mrf.mxu0 }
 0x172   :  { %144 = vadd.xlane.f32.xlu0 %v143_v60 }
 0x1c0   :  { %v127_v62 = vpop.xlane.xlu0 %126 }
 0x1c1   :  { %v131_v27 = vsub.f32 %v119_v26, %v127_v62 }
 0x1c3   :  { %v132_v32 = vmul.f32 %v396_v59, %v131_v27 }
 0x1c5   :  { %v133_v35 = vsel %vm77_vm7, %v132_v32, 0.0 }
 0x1d0   :  { %v80_v63 = vpop.xlane.xlu0 %79 }
 0x1d1   :  { %v81_v0 = vrot.slane %v80_v63, 4 }
 0x1d3   :  { %v82_v1 = vadd.f32 %v81_v0, %v80_v63 }
 0x1d4   :  { %v90_v2 = vpop.xlane.xlu0 %89 }
 0x1d5   :  { %v83_v3 = vrot.slane %v82_v1, 2  ;;  %v91_v4 = vrot.slane %v90_v2, 4 }
 0x1d7   :  { %v92_v5 = vadd.f32 %v91_v4, %v90_v2  ;;  %v84_v7 = vadd.f32 %v83_v3, %v82_v1 }
 0x1d9   :  { %v93_v8 = vrot.slane %v92_v5, 2  ;;  %v85_v9 = vrot.slane %v84_v7, 1 }
 0x1db   :  { %v86_v10 = vadd.f32 %v85_v9, %v84_v7  ;;  %v94_v11 = vadd.f32 %v93_v8, %v92_v5 }
 0x1dd   :  { %406 = vpush %v86_v10  ;;  %v95_v12 = vrot.slane %v94_v11, 1 }
 0x1df   :  { %v96_v6 = vadd.f32 %v95_v12, %v94_v11 }
 0x1e1   :  { %408 = vpush %v96_v6 }
 0x1f7   :  { %v700_v15 = vpop.xlane.xlu1 %299  ;;  %v296_v1 = vpop.xlane.xlu0 %295 }
 0x1f8   :  { %v301_v16 = vsub.f32 %v297_v53, %v700_v15  ;;  %v196_v53 = vmul.f32 %v194_v48, %v193_v18 }
 0x1fa   :  { %v302_v19 = vmul.f32 1.442695, %v301_v16  ;;  %v197_v58 = vsub.f32 %v195_v52, %v196_v53 }
 0x1fb   :  { %v145_v2 = vpop.xlane.xlu0 %144 }
 0x1fc   :  { %444 = vpow2.f32 %v302_v19  ;;  %v146_v3 = vrot.slane %v145_v2, 4 }
 0x1fd   :  { %446 = vpow2.f32 %v166_v20 }
 0x1fe   :  { %448 = vpow2.f32 %v200_v24  ;;  %v147_v4 = vadd.f32 %v146_v3, %v145_v2 }
 0x200   :  { %v148_v7 = vrot.slane %v147_v4, 2 }
 0x202   :  { %v149_v10 = vadd.f32 %v148_v7, %v147_v4 }
 0x204   :  { %v150_v6 = vrot.slane %v149_v10, 1 }
 0x206   :  { %v151_v17 = vadd.f32 %v150_v6, %v149_v10 }
 0x209   :  { %v445_v29 = vpop.eup %444 }
 0x20a   :  { %v447_v30 = vpop.eup %446  ;;  %v304_v31 = vsel %vm107_vm2, %v445_v29, 0.0 }
 0x20b   :  { %305 = vadd.xlane.f32.xlu1 %v304_v31  ;;  %v168_v33 = vadd.f32 1.0, %v447_v30  ;;  %v449_v34 = vpop.eup %448  ;;  %v171_v28 = vmul.f32 -0.5, %v447_v30  ;;  %v174_v42 = vand.u32 2147483647, %v447_v30 }
 0x20c   :  { %v202_v36 = vadd.f32 1.0, %v449_v34  ;;  %v205_v45 = vmul.f32 -0.5, %v449_v34  ;;  %v208_v57 = vand.u32 2147483647, %v449_v34 }
 0x20d   :  { %450 = vlog2.f32 %v168_v33  ;;  %v172_v39 = vadd.f32 1.0, %v171_v28  ;;  %vm175_vm11 = vcmp.lt.f32.partialorder %v174_v42, 0.0004427343 }
 0x20e   :  { %452 = vlog2.f32 %v202_v36  ;;  %s709_s4 = spop %406  ;;  %v206_v49 = vadd.f32 1.0, %v205_v45  ;;  %vm209_vm12 = vcmp.lt.f32.partialorder %v208_v57, 0.0004427343 }
 0x20f   :  { %134 = vadd.xlane.f32.xlu1 %v133_v35  ;;  %v173_v44 = vmul.f32 %v447_v30, %v172_v39 }
 0x210   :  { %v207_v56 = vmul.f32 %v449_v34, %v206_v49 }
 0x212   :  { %s409_s6 = spop %408 }
 0x213   :  { %v98_v37 = vstv %s409_s6 }
 0x214   :  { %454 = vrcp.f32 %v98_v37 }
 0x21a   :  { %v451_v43 = vpop.eup %450 }
 0x21b   :  { %v170_v47 = vmul.f32 0.6931472, %v451_v43  ;;  %v453_v50 = vpop.eup %452 }
 0x21c   :  { %v204_v55 = vmul.f32 0.6931472, %v453_v50 }
 0x21d   :  { %v176_v51 = vsel %vm175_vm11, %v173_v44, %v170_v47 }
 0x21e   :  { %v177_v54 = vadd.f32 %v176_v51, %v163_v46  ;;  %v210_v61 = vsel %vm209_vm12, %v207_v56, %v204_v55 }
 0x21f   :  { %v211_v62 = vadd.f32 %v210_v61, %v197_v58 }
 0x220   :  { %v178_v59 = vsel %vm107_vm2, %v177_v54, 0.0 }
 0x221   :  { %v455_v60 = vpop.eup %454  ;;  %179 = vadd.xlane.f32.xlu1 %v178_v59  ;;  %v212_v63 = vsel %vm107_vm2, %v211_v62, 0.0 }
 0x222   :  { %410 = vpush %v455_v60  ;;  %213 = vadd.xlane.f32.xlu0 %v212_v63 }
 0x253   :  { %s411_s5 = spop %410 }
 0x254   :  { %s101_s7 = smul.f32 %s411_s5, %s709_s4 }
 0x256   :  { %v102_v0 = vstv %s101_s7 }
 0x257   :  { %104 = vst.msk [vmem:[#allocation2] sm:$0x1] %vm103_vm13, %v102_v0 }
 0x294   :  { %v306_v5 = vpop.xlane.xlu1 %305 }
 0x295   :  { %456 = vlog2.f32 %v306_v5 }
 0x298   :  { %v135_v8 = vpop.xlane.xlu1 %134 }
 0x299   :  { %v136_v9 = vrot.slane %v135_v8, 4 }
 0x29b   :  { %v137_v11 = vadd.f32 %v136_v9, %v135_v8 }
 0x29d   :  { %v138_v12 = vrot.slane %v137_v11, 2 }
 0x29f   :  { %v139_v13 = vadd.f32 %v138_v12, %v137_v11 }
 0x2a1   :  { %v140_v14 = vrot.slane %v139_v13, 1 }
 0x2a2   :  { %v457_v16 = vpop.eup %456 }
 0x2a3   :  { %v308_v18 = vmul.f32 0.6931472, %v457_v16  ;;  %v141_v19 = vadd.f32 %v140_v14, %v139_v13 }
 0x2a5   :  { %412 = vpush %v141_v19  ;;  %v309_v20 = vadd.f32 %v308_v18, %v700_v15 }
 0x2a6   :  { %414 = vpush %v151_v17 }
 0x2a7   :  { %v310_v21 = vsub.f32 %v296_v1, %v309_v20 }
 0x2a9   :  { %v311_v22 = vsel %vm77_vm7, %v310_v21, 0.0 }
 0x2aa   :  { %312 = vadd.xlane.f32.xlu1 %v311_v22  ;;  %v180_v23 = vpop.xlane.xlu1 %179 }
 0x2ab   :  { %v214_v24 = vpop.xlane.xlu0 %213  ;;  %v181_v25 = vrot.slane %v180_v23, 4 }
 0x2ac   :  { %v215_v26 = vrot.slane %v214_v24, 4 }
 0x2ad   :  { %v182_v27 = vadd.f32 %v181_v25, %v180_v23 }
 0x2ae   :  { %v216_v29 = vadd.f32 %v215_v26, %v214_v24 }
 0x2af   :  { %v183_v31 = vrot.slane %v182_v27, 2 }
 0x2b0   :  { %v217_v32 = vrot.slane %v216_v29, 2 }
 0x2b1   :  { %v184_v33 = vadd.f32 %v183_v31, %v182_v27 }
 0x2b2   :  { %v218_v15 = vadd.f32 %v217_v32, %v216_v29 }
 0x2b3   :  { %v185_v34 = vrot.slane %v184_v33, 1 }
 0x2b4   :  { %v219_v35 = vrot.slane %v218_v15, 1 }
 0x2b5   :  { %v186_v36 = vadd.f32 %v185_v34, %v184_v33 }
 0x2b6   :  { %v220_v37 = vadd.f32 %v219_v35, %v218_v15 }
 0x2d6   :  { %s723_s18 = spop %412 }
 0x2d7   :  { %s415_s19 = spop %414 }
 0x2d8   :  { %v153_v30 = vstv %s415_s19 }
 0x2d9   :  { %458 = vrcp.f32 %v153_v30 }
 0x2e6   :  { %v459_v28 = vpop.eup %458 }
 0x2e7   :  { %416 = vpush %v459_v28 }
 0x2e8   :  { %418 = vpush %v186_v36 }
 0x2e9   :  { %420 = vpush %v220_v37 }
 0x2ea   :  { %471 = shalt.err (!%p468_p4)
}
 0x2eb   :  { %336 = dma.vmem_to_hbm [thread:$0]  %s334_s21, 16, %s764_s11, [#allocation3]  }
 0x2ec   :  { %s570_s0 = smov [#allocation4]   ;;  %s571_s2 = smov [#allocation7]  }
 0x2ed   :  { %s343_s24 = sshll.u32 %s570_s0, 4  ;;  %s363_s9 = sshll.u32 %s571_s2, 4  ;;  %s344_s24 = int_to_ptr.vmem [resolvable:$true] %s343_s24  ;;  %s730_s9 = int_to_ptr.vmem [resolvable:$true] %s363_s9 }
 0x2ee   :  { %s572_s25 = smov [#allocation6]   ;;  %s480_s11 = scalar_lea.vmem %s344_s24, 16 }
 0x2ef   :  { %s353_s10 = sshll.u32 %s572_s25, 4  ;;  %p481_p5 = scmp.ne.s32.totalorder %s344_s24, %s480_s11  ;;  %s354_s10 = int_to_ptr.vmem [resolvable:$true] %s353_s10 }
 0x2f0   :  { %s484_s29 = scalar_lea.vmem %s344_s24, 32  ;;  %p485_p6 = scmp.lt.s32.totalorder %s344_s24, %s344_s24 }
 0x2f1   :  { %p486_p7 = scmp.lt.s32.totalorder %s484_s29, %s480_s11 }
 0x2f3   :  { %p487_p8 = por %p486_p7, %p485_p6 }
 0x2f5   :  { %p488_p9 = pnand %p487_p8, %p481_p5 }
 0x318   :  { %s417_s3 = spop %416 }
 0x319   :  { %s156_s26 = smul.f32 %s417_s3, %s723_s18  ;;  %s419_s27 = spop %418 }
 0x31a   :  { %s190_s28 = smul.f32 0.0625, %s419_s27  ;;  %s421_s4 = spop %420 }
 0x31b   :  { %v157_v38 = vstv %s156_s26  ;;  %s224_s6 = smul.f32 0.0625, %s421_s4 }
 0x31c   :  { %v191_v39 = vstv %s190_s28  ;;  %158 = vst.msk [vmem:[#allocation4] sm:$0x1] %vm103_vm13, %v157_v38 }
 0x31d   :  { %v225_v40 = vstv %s224_s6 }
 0x31e   :  { %491 = shalt.err (!%p488_p9)
}
 0x31f   :  { %346 = dma.vmem_to_hbm [thread:$0]  %s344_s24, 16, %s765_s12, [#allocation5]   ;;  %192 = vst.msk [vmem:[#allocation6] sm:$0x1] %vm103_vm13, %v191_v39  ;;  %226 = vst.msk [vmem:[#allocation7] sm:$0x1] %vm103_vm13, %v225_v40 }
 0x320   :  { %s500_s17 = scalar_lea.vmem %s354_s10, 16  ;;  %s504_s5 = scalar_lea.vmem %s354_s10, 32 }
 0x321   :  { %p501_p10 = scmp.ne.s32.totalorder %s354_s10, %s500_s17  ;;  %p505_p11 = scmp.lt.s32.totalorder %s354_s10, %s354_s10 }
 0x322   :  { %p506_p12 = scmp.lt.s32.totalorder %s504_s5, %s500_s17 }
 0x324   :  { %p507_p13 = por %p506_p12, %p505_p11 }
 0x326   :  { %p508_p0 = pnand %p507_p13, %p501_p10 }
 0x328   :  { %511 = shalt.err (!%p508_p0)
}
 0x329   :  { %356 = dma.vmem_to_hbm [thread:$0]  %s354_s10, 16, %s766_s13, [#allocation5]  }
 0x32a   :  { %s520_s12 = scalar_lea.vmem %s730_s9, 16  ;;  %s524_s19 = scalar_lea.vmem %s730_s9, 32 }
 0x32b   :  { %p521_p1 = scmp.ne.s32.totalorder %s730_s9, %s520_s12  ;;  %p525_p2 = scmp.lt.s32.totalorder %s730_s9, %s730_s9 }
 0x32c   :  { %p526_p3 = scmp.lt.s32.totalorder %s524_s19, %s520_s12 }
 0x32e   :  { %p527_p4 = por %p526_p3, %p525_p2 }
 0x330   :  { %p528_p5 = pnand %p527_p4, %p521_p1 }
 0x332   :  { %531 = shalt.err (!%p528_p5)
}
 0x333   :  { %366 = dma.vmem_to_hbm [thread:$0]  %s730_s9, 16, %s767_s14, [#allocation8]   ;;  %v313_v41 = vpop.xlane.xlu1 %312 }
 0x334   :  { %v314_v42 = vrot.slane %v313_v41, 4  ;;  %s573_s23 = smov [#allocation9]  }
 0x335   :  { %s373_s1 = sshll.u32 %s573_s23, 4  ;;  %s374_s1 = int_to_ptr.vmem [resolvable:$true] %s373_s1 }
 0x336   :  { %v315_v43 = vadd.f32 %v314_v42, %v313_v41  ;;  %s540_s0 = scalar_lea.vmem %s374_s1, 16  ;;  %s544_s14 = scalar_lea.vmem %s374_s1, 32 }
 0x337   :  { %p541_p6 = scmp.ne.s32.totalorder %s374_s1, %s540_s0  ;;  %p545_p7 = scmp.lt.s32.totalorder %s374_s1, %s374_s1 }
 0x338   :  { %v316_v44 = vrot.slane %v315_v43, 2  ;;  %p546_p8 = scmp.lt.s32.totalorder %s544_s14, %s540_s0 }
 0x33a   :  { %v317_v45 = vadd.f32 %v316_v44, %v315_v43  ;;  %p547_p9 = por %p546_p8, %p545_p7 }
 0x33c   :  { %v318_v46 = vrot.slane %v317_v45, 1  ;;  %p548_p10 = pnand %p547_p9, %p541_p6 }
 0x33e   :  { %v319_v47 = vadd.f32 %v318_v46, %v317_v45 }
 0x340   :  { %422 = vpush %v319_v47 }
 0x371   :  { %s423_s13 = spop %422 }
 0x372   :  { %s323_s22 = smul.f32 0.25, %s423_s13 }
 0x374   :  { %s324_s8 = ssub.f32 0.0, %s323_s22 }
 0x376   :  { %v325_v48 = vstv %s324_s8 }
 0x377   :  { %326 = vst.msk [vmem:[#allocation9] sm:$0x1] %vm103_vm13, %v325_v48 }
 0x378   :  { %551 = shalt.err (!%p548_p10)
}
 0x379   :  { %376 = dma.vmem_to_hbm [thread:$0]  %s374_s1, 16, %s768_s15, [#allocation8]  }
 0x37a   :  { %560 = dma.done.wait [#allocation3], 16  }
 0x37b   :  { %561 = vsyncadd [#allocation3], 4294967280 }
 0x37c   :  { %562 = dma.done.wait [#allocation5], 32  }
 0x37d   :  { %563 = vsyncadd [#allocation5], 4294967264 }
 0x37e   :  { %564 = dma.done.wait [#allocation8], 32  }
 0x37f   :  { %565 = vsyncadd [#allocation8], 4294967264 }
 0x380   :  { %392 = vsyncpa [#allocation3], 1 }
 0x381   :  { %393 = vsyncpa [#allocation5], 1 }
 0x382   :  { %394 = vsyncpa [#allocation8], 1 }

</bundles_post_ra>
